<compile_context>
chip_gen: v5e
topology: v5e:2x2
jax: 0.10.0
libtpu: 0.0.40
codegen_flags: <defaults>
</compile_context>

<pallas_src>
import functools

import jax
import jax.numpy as jnp
from jax.experimental import pallas as pl
from jax.experimental.pallas import tpu as pltpu


# --------------------------------------------------------------------------
# helpers
# --------------------------------------------------------------------------
def _vmem_limit_bytes():
    """Scoped-VMEM limit with headroom: ~64 MiB on v5e/v6e, ~48 MiB on v7x."""
    cap = 128 * 1024 * 1024
    try:
        info = pltpu.get_tpu_info()
        cap = int(getattr(info, "vmem_capacity_bytes", cap))
    except Exception:
        pass
    return max(32 * 1024 * 1024, min(64 * 1024 * 1024, cap - 16 * 1024 * 1024))


def _round_up(x, m):
    return ((x + m - 1) // m) * m


def _choose_lane_tile(hw, itemsize, max_lane=8192, block_budget=4 * 1024 * 1024):
    """Pick a lane tile for the HW axis.

    Returns (lane_tile, hw_padded).  Prefers the largest multiple-of-128
    divisor of hw; otherwise a full-extent block (always legal); otherwise
    pads hw to a multiple of 512 (zeros are harmless for sum / gate)."""
    best = None
    t = 128
    while t <= min(hw, max_lane):
        if hw % t == 0:
            best = t
        t += 128
    if best is not None:
        return best, hw
    if hw <= max_lane:
        return hw, hw                       # full extent: always a legal block
    hw_p = _round_up(hw, 512)
    best, t = 512, 512
    while t <= min(hw_p, max_lane):
        if hw_p % t == 0:
            best = t
        t += 512
    return best, hw_p


def _choose_row_tile(bn, lane_tile, dtype, block_budget=4 * 1024 * 1024):
    """Sublane/dtype-aware row tile; prefers >= 2 blocks on the parallel axis."""
    itemsize = jnp.dtype(dtype).itemsize
    min_row = {4: 8, 2: 16, 1: 32}.get(itemsize, 8)
    budget_rows = max(min_row, block_budget // max(1, lane_tile * itemsize))
    candidates = (1024, 512, 256, 128, 64, 32, 16, 8)
    # Prefer tiles leaving >= 2 blocks on the (parallel) row axis: v7x megacore.
    for c in candidates:
        if min_row <= c <= budget_rows and c <= bn and bn % c == 0 and bn // c >= 2:
            return c
    for c in candidates:
        if min_row <= c <= budget_rows and c <= bn and bn % c == 0:
            return c
    return bn                                # full extent is always legal


def _choose_batch_tile(batch, slab_bytes, block_budget=4 * 1024 * 1024):
    bt = max(1, min(batch, block_budget // max(1, slab_bytes)))
    if batch >= 2:
        bt = min(bt, max(1, batch // 2))     # keep >= 2 grid blocks (megacore)
    while batch % bt != 0:
        bt -= 1
    return bt


# --------------------------------------------------------------------------
# fused path: x resident in VMEM, MLP in-kernel (elementwise + reductions only)
# --------------------------------------------------------------------------
def _fused_kernel(x_ref, s1_ref, w1c_ref, w2t_ref, b2_ref, out_ref, *, inv_hw):
    # x_ref:  (bt, N, HW)   input dtype
    # s1_ref: (bt, 1, N)    f32  = side_info @ W1[N:] + b1   (per batch row)
    # w1c:    (1, N, N)     f32  = W1[:N]      (in on sublanes, out on lanes)
    # w2t:    (1, N, N)     f32  = W2.T        (out on sublanes, in on lanes)
    # b2:     (1, N, 1)     f32
    xf = x_ref[...].astype(jnp.float32)                          # (bt, N, HW)
    context = jnp.sum(xf, axis=2, keepdims=True) * inv_hw        # (bt, N, 1)
    # layer 1: h[b, j] = sum_n W1c[n, j] * context[b, n] + s1[b, j]
    h = jnp.sum(w1c_ref[...] * context, axis=1, keepdims=True) + s1_ref[...]
    h = jnp.where(h > 0.0, h, 0.01 * h)                          # LeakyReLU
    # layer 2: mask[b, m] = sigmoid(sum_j W2[j, m] * h[b, j] + b2[m])
    mask = jax.nn.sigmoid(
        jnp.sum(w2t_ref[...] * h, axis=2, keepdims=True) + b2_ref[...])  # (bt, N, 1)
    out_ref[...] = (xf * mask).astype(out_ref.dtype)


def _afmodule_fused(x, side_info, params, vmem_limit):
    B, N, H, W = x.shape
    HW = H * W
    f32 = jnp.float32
    itemsize = jnp.dtype(x.dtype).itemsize

    x3 = x.reshape(B, N, HW)
    w1 = params["w1"].astype(f32)
    b1 = params["b1"].astype(f32)
    w2 = params["w2"].astype(f32)
    b2 = params["b2"].astype(f32)

    w1c = w1[:N, :].reshape(1, N, N)                       # context part of layer 1
    s1 = (side_info.astype(f32) @ w1[N:, :] + b1).reshape(B, 1, N)
    w2t = w2.T.reshape(1, N, N)
    b2c = b2.reshape(1, N, 1)

    slab_bytes = _round_up(N, 8) * HW * 4                  # f32 working footprint
    bt = _choose_batch_tile(B, slab_bytes)

    kernel = functools.partial(_fused_kernel, inv_hw=1.0 / HW)
    out3 = pl.pallas_call(
        kernel,
        out_shape=jax.ShapeDtypeStruct((B, N, HW), x.dtype),
        grid_spec=pltpu.PrefetchScalarGridSpec(
            num_scalar_prefetch=0,
            grid=(B // bt,),
            in_specs=[
                pl.BlockSpec((bt, N, HW), lambda b: (b, 0, 0)),
                pl.BlockSpec((bt, 1, N), lambda b: (b, 0, 0)),
                pl.BlockSpec((1, N, N), lambda b: (0, 0, 0)),
                pl.BlockSpec((1, N, N), lambda b: (0, 0, 0)),
                pl.BlockSpec((1, N, 1), lambda b: (0, 0, 0)),
            ],
            out_specs=pl.BlockSpec((bt, N, HW), lambda b: (b, 0, 0)),
        ),
        compiler_params=pltpu.CompilerParams(
            dimension_semantics=("parallel",),
            vmem_limit_bytes=vmem_limit,
        ),
        cost_estimate=pl.CostEstimate(
            flops=2 * B * N * HW + 4 * B * N * N,
            transcendentals=2 * B * N,
            bytes_accessed=2 * B * N * HW * itemsize),
    )(x3, s1, w1c, w2t, b2c)
    return out3.reshape(B, N, H, W)


# --------------------------------------------------------------------------
# tiled path: pass 1 (spatial sum) + tiny JAX MLP + pass 2 (gate stream)
# --------------------------------------------------------------------------
def _reduce_kernel(x_ref, sum_ref):
    # x_ref: (row_tile, lane_tile); sum_ref: (row_tile, 1) f32, resident over k.
    # Accumulate directly into the resident output: no full-width f32 scratch,
    # no extra VMEM writeback stream; the per-step cross-lane reduce lands on
    # the XLU and hides under the HBM DMA.
    @pl.when(pl.program_id(1) == 0)
    def _():
        sum_ref[...] = jnp.zeros_like(sum_ref)

    sum_ref[...] += jnp.sum(x_ref[...].astype(jnp.float32), axis=1, keepdims=True)


def _gate_kernel(mask_ref, x_ref, out_ref):
    # mask_ref: (row_tile, 1) f32 (no double rounding); x/out: (row_tile, lane_tile)
    out_ref[...] = (x_ref[...] * mask_ref[...]).astype(out_ref.dtype)


def _afmodule_two_pass(x, side_info, params, vmem_limit):
    B, N, H, W = x.shape
    HW = H * W
    BN = B * N
    f32 = jnp.float32
    itemsize = jnp.dtype(x.dtype).itemsize

    x2 = x.reshape(BN, HW)                      # lane-dense slab (free reshape)
    lane_tile, HWp = _choose_lane_tile(HW, itemsize)
    if HWp != HW:
        x2 = jnp.pad(x2, ((0, 0), (0, HWp - HW)))   # rare fallback; zeros are inert
    row_tile = _choose_row_tile(BN, lane_tile, x.dtype)
    n_rows = BN // row_tile
    n_lanes = HWp // lane_tile

    # ---- pass 1: per-(b, n) spatial sums, f32 accumulation into the output ----
    sums = pl.pallas_call(
        _reduce_kernel,
        out_shape=jax.ShapeDtypeStruct((BN, 1), jnp.float32),
        grid_spec=pltpu.PrefetchScalarGridSpec(
            num_scalar_prefetch=0,
            grid=(n_rows, n_lanes),             # reduction (HW) axis last
            in_specs=[pl.BlockSpec((row_tile, lane_tile), lambda i, k: (i, k))],
            out_specs=pl.BlockSpec((row_tile, 1), lambda i, k: (i, 0)),
        ),
        compiler_params=pltpu.CompilerParams(
            dimension_semantics=("parallel", "arbitrary"),
            vmem_limit_bytes=vmem_limit,
        ),
        cost_estimate=pl.CostEstimate(
            flops=BN * HWp, transcendentals=0,
            bytes_accessed=BN * HWp * itemsize + BN * 4),
    )(x2)

    # ---- tiny MLP on (B, N): far below MXU tile size -> plain JAX, f32 ----
    context = sums.reshape(B, N) * (1.0 / HW)
    ci = jnp.concatenate([context, side_info.astype(f32)], axis=1)
    h = ci @ params["w1"].astype(f32) + params["b1"].astype(f32)
    h = jnp.where(h > 0, h, 0.01 * h)           # LeakyReLU (PyTorch default slope)
    mask = jax.nn.sigmoid(h @ params["w2"].astype(f32) + params["b2"].astype(f32))
    mask2 = mask.reshape(BN, 1)                 # keep f32: gate applied at full precision

    # ---- pass 2: stream x once, multiply by the per-row gate ----
    out2 = pl.pallas_call(
        _gate_kernel,
        out_shape=jax.ShapeDtypeStruct((BN, HWp), x.dtype),
        grid_spec=pltpu.PrefetchScalarGridSpec(
            num_scalar_prefetch=0,
            grid=(n_rows, n_lanes),
            in_specs=[pl.BlockSpec((row_tile, 1), lambda i, j: (i, 0)),
                      pl.BlockSpec((row_tile, lane_tile), lambda i, j: (i, j))],
            out_specs=pl.BlockSpec((row_tile, lane_tile), lambda i, j: (i, j)),
        ),
        compiler_params=pltpu.CompilerParams(
            dimension_semantics=("parallel", "parallel"),   # both TCs on v7x
            vmem_limit_bytes=vmem_limit,
        ),
        cost_estimate=pl.CostEstimate(
            flops=BN * HWp, transcendentals=0,
            bytes_accessed=2 * BN * HWp * itemsize),
    )(mask2, x2)

    if HWp != HW:
        out2 = out2[:, :HW]
    return out2.reshape(B, N, H, W)


# --------------------------------------------------------------------------
# public forward
# --------------------------------------------------------------------------
def afmodule_forward(x, side_info, params, *, fuse_threshold_bytes=4 * 1024 * 1024):
    """AFModule forward.  x: (B, N, H, W) NCHW, side_info: (B, num_dim)."""
    B, N, H, W = x.shape
    HW = H * W
    vmem_limit = _vmem_limit_bytes()
    slab_bytes = _round_up(N, 8) * HW * 4       # per-batch f32 working footprint
    if slab_bytes <= fuse_threshold_bytes:
        return _afmodule_fused(x, side_info, params, vmem_limit)
    return _afmodule_two_pass(x, side_info, params, vmem_limit)


def init_params(key, N, num_dim):
    """Deterministic init matching the nn.Linear shapes (Kaiming-uniform-ish)."""
    k1, k2, k3, k4 = jax.random.split(key, 4)
    bound1 = 1.0 / jnp.sqrt(N + num_dim)
    bound2 = 1.0 / jnp.sqrt(N)
    # Stored as (in_features, out_features) so the forward does x @ W + b.
    w1 = jax.random.uniform(k1, (N + num_dim, N), jnp.float32, -bound1, bound1)
    b1 = jax.random.uniform(k2, (N,), jnp.float32, -bound1, bound1)
    w2 = jax.random.uniform(k3, (N, N), jnp.float32, -bound2, bound2)
    b2 = jax.random.uniform(k4, (N,), jnp.float32, -bound2, bound2)
    return {"w1": w1, "b1": b1, "w2": w2, "b2": b2}


def afmodule_reference(x, side_info, params):
    """Pure-JAX reference mirroring the PyTorch forward exactly."""
    B, N, H, W = x.shape
    context = jnp.mean(x, axis=(2, 3))                        # (B, N)
    ci = jnp.concatenate([context, side_info], axis=1)        # (B, N+D)
    h = ci @ params["w1"] + params["b1"]
    h = jnp.where(h > 0, h, 0.01 * h)
    mask = jax.nn.sigmoid(h @ params["w2"] + params["b2"])    # (B, N)
    return mask.reshape(B, N, 1, 1) * x


if __name__ == "__main__":
    key = jax.random.PRNGKey(0)
    kx, ks, kp = jax.random.split(key, 3)

    B, N, num_dim, H, W = 2, 4, 8, 16, 16
    x = jax.random.normal(kx, (B, N, H, W), jnp.float32)
    side_info = jax.random.normal(ks, (B, num_dim), jnp.float32)
    params = init_params(kp, N, num_dim)

    ref = afmodule_reference(x, side_info, params)

    # Fused (VMEM-resident) path — the default for small feature maps.
    out_fused = jax.block_until_ready(afmodule_forward(x, side_info, params))
    assert out_fused.shape == (B, N, H, W)
    assert jnp.allclose(out_fused, ref, atol=1e-5, rtol=1e-5), "fused path mismatch"

    # Tiled two-pass streaming path (forced) — used for large feature maps.
    out_tiled = jax.block_until_ready(
        afmodule_forward(x, side_info, params, fuse_threshold_bytes=0))
    assert out_tiled.shape == (B, N, H, W)
    assert jnp.allclose(out_tiled, ref, atol=1e-5, rtol=1e-5), "tiled path mismatch"

    print("KERNEL_OK")
</pallas_src>

<mosaic_0001>
module attributes {stable_mosaic.version = 11 : i64} {
  func.func @_fused_kernel(%arg0: i32, %arg1: memref<1x4x256xf32, #tpu.memory_space<vmem>>, %arg2: memref<1x1x4xf32, #tpu.memory_space<vmem>>, %arg3: memref<1x4x4xf32, #tpu.memory_space<vmem>>, %arg4: memref<1x4x4xf32, #tpu.memory_space<vmem>>, %arg5: memref<1x4x1xf32, #tpu.memory_space<vmem>>, %arg6: memref<1x4x256xf32, #tpu.memory_space<vmem>>) attributes {dimension_semantics = [#tpu.dimension_semantics<parallel>], iteration_bounds = array<i64: 2>, scalar_prefetch = 0 : i64, scratch_operands = 0 : i64, tpu.core_type = #tpu.core_type<tc>, window_params = [{transform_indices = @transform_0, window_bounds = array<i64: 1, 4, 256>}, {transform_indices = @transform_1, window_bounds = array<i64: 1, 1, 4>}, {pipeline_mode = #tpu.pipeline_mode<synchronous>, transform_indices = @transform_2, window_bounds = array<i64: 1, 4, 4>}, {pipeline_mode = #tpu.pipeline_mode<synchronous>, transform_indices = @transform_3, window_bounds = array<i64: 1, 4, 4>}, {pipeline_mode = #tpu.pipeline_mode<synchronous>, transform_indices = @transform_4, window_bounds = array<i64: 1, 4, 1>}, {transform_indices = @transform_5, window_bounds = array<i64: 1, 4, 256>}]} {
    %c0 = arith.constant 0 : index
    %c0_0 = arith.constant 0 : index
    %c0_1 = arith.constant 0 : index
    %0 = vector.load %arg1[%c0, %c0_0, %c0_1] : memref<1x4x256xf32, #tpu.memory_space<vmem>>, vector<1x4x256xf32>
    %cst = arith.constant dense<0.000000e+00> : vector<1x4xf32>
    %1 = vector.multi_reduction <add>, %0, %cst [2] : vector<1x4x256xf32> to vector<1x4xf32>
    %2 = vector.shape_cast %1 : vector<1x4xf32> to vector<1x4x1xf32>
    %cst_2 = arith.constant 3.906250e-03 : f32
    %3 = vector.broadcast %cst_2 : f32 to vector<1x4x1xf32>
    %4 = arith.mulf %2, %3 : vector<1x4x1xf32>
    %c0_3 = arith.constant 0 : index
    %c0_4 = arith.constant 0 : index
    %c0_5 = arith.constant 0 : index
    %5 = vector.load %arg3[%c0_3, %c0_4, %c0_5] : memref<1x4x4xf32, #tpu.memory_space<vmem>>, vector<1x4x4xf32>
    %6 = vector.broadcast %4 : vector<1x4x1xf32> to vector<1x4x4xf32>
    %7 = arith.mulf %5, %6 : vector<1x4x4xf32>
    %cst_6 = arith.constant dense<0.000000e+00> : vector<1x4xf32>
    %8 = vector.multi_reduction <add>, %7, %cst_6 [1] : vector<1x4x4xf32> to vector<1x4xf32>
    %9 = vector.shape_cast %8 : vector<1x4xf32> to vector<1x1x4xf32>
    %c0_7 = arith.constant 0 : index
    %c0_8 = arith.constant 0 : index
    %c0_9 = arith.constant 0 : index
    %10 = vector.load %arg2[%c0_7, %c0_8, %c0_9] : memref<1x1x4xf32, #tpu.memory_space<vmem>>, vector<1x1x4xf32>
    %11 = arith.addf %9, %10 : vector<1x1x4xf32>
    %cst_10 = arith.constant 0.000000e+00 : f32
    %12 = vector.broadcast %cst_10 : f32 to vector<1x1x4xf32>
    %13 = arith.cmpf ogt, %11, %12 : vector<1x1x4xf32>
    %cst_11 = arith.constant 0.00999999977 : f32
    %14 = vector.broadcast %cst_11 : f32 to vector<1x1x4xf32>
    %15 = arith.mulf %14, %11 : vector<1x1x4xf32>
    %16 = arith.select %13, %11, %15 : vector<1x1x4xi1>, vector<1x1x4xf32>
    %c0_12 = arith.constant 0 : index
    %c0_13 = arith.constant 0 : index
    %c0_14 = arith.constant 0 : index
    %17 = vector.load %arg4[%c0_12, %c0_13, %c0_14] : memref<1x4x4xf32, #tpu.memory_space<vmem>>, vector<1x4x4xf32>
    %18 = vector.broadcast %16 : vector<1x1x4xf32> to vector<1x4x4xf32>
    %19 = arith.mulf %17, %18 : vector<1x4x4xf32>
    %cst_15 = arith.constant dense<0.000000e+00> : vector<1x4xf32>
    %20 = vector.multi_reduction <add>, %19, %cst_15 [2] : vector<1x4x4xf32> to vector<1x4xf32>
    %21 = vector.shape_cast %20 : vector<1x4xf32> to vector<1x4x1xf32>
    %c0_16 = arith.constant 0 : index
    %c0_17 = arith.constant 0 : index
    %c0_18 = arith.constant 0 : index
    %22 = vector.load %arg5[%c0_16, %c0_17, %c0_18] : memref<1x4x1xf32, #tpu.memory_space<vmem>>, vector<1x4x1xf32>
    %23 = arith.addf %21, %22 : vector<1x4x1xf32>
    %24 = arith.negf %23 : vector<1x4x1xf32>
    %25 = math.exp %24 : vector<1x4x1xf32>
    %cst_19 = arith.constant 1.000000e+00 : f32
    %26 = vector.broadcast %cst_19 : f32 to vector<1x4x1xf32>
    %27 = arith.addf %26, %25 : vector<1x4x1xf32>
    %28 = arith.divf %26, %27 : vector<1x4x1xf32>
    %29 = vector.broadcast %28 : vector<1x4x1xf32> to vector<1x4x256xf32>
    %30 = arith.mulf %0, %29 : vector<1x4x256xf32>
    %c0_20 = arith.constant 0 : index
    %c0_21 = arith.constant 0 : index
    %c0_22 = arith.constant 0 : index
    %31 = vector.load %arg6[%c0_20, %c0_21, %c0_22] : memref<1x4x256xf32, #tpu.memory_space<vmem>>, vector<1x4x256xf32>
    tpu.vector_store %arg6[%c0_20, %c0_21, %c0_22], %30 {strides = array<i32>} : memref<1x4x256xf32, #tpu.memory_space<vmem>>, vector<1x4x256xf32>,
    return
  }
  func.func @transform_0(%arg0: i32) -> (i32, i32, i32) {
    %c0_i32 = arith.constant 0 : i32
    %c0_i32_0 = arith.constant 0 : i32
    %c0_i32_1 = arith.constant 0 : i32
    return %arg0, %c0_i32, %c0_i32_0 : i32, i32, i32
  }
  func.func @transform_1(%arg0: i32) -> (i32, i32, i32) {
    %c0_i32 = arith.constant 0 : i32
    %c0_i32_0 = arith.constant 0 : i32
    %c0_i32_1 = arith.constant 0 : i32
    return %arg0, %c0_i32, %c0_i32_0 : i32, i32, i32
  }
  func.func @transform_2(%arg0: i32) -> (i32, i32, i32) {
    %c0_i32 = arith.constant 0 : i32
    %c0_i32_0 = arith.constant 0 : i32
    %c0_i32_1 = arith.constant 0 : i32
    %c0_i32_2 = arith.constant 0 : i32
    return %c0_i32, %c0_i32_0, %c0_i32_1 : i32, i32, i32
  }
  func.func @transform_3(%arg0: i32) -> (i32, i32, i32) {
    %c0_i32 = arith.constant 0 : i32
    %c0_i32_0 = arith.constant 0 : i32
    %c0_i32_1 = arith.constant 0 : i32
    %c0_i32_2 = arith.constant 0 : i32
    return %c0_i32, %c0_i32_0, %c0_i32_1 : i32, i32, i32
  }
  func.func @transform_4(%arg0: i32) -> (i32, i32, i32) {
    %c0_i32 = arith.constant 0 : i32
    %c0_i32_0 = arith.constant 0 : i32
    %c0_i32_1 = arith.constant 0 : i32
    %c0_i32_2 = arith.constant 0 : i32
    return %c0_i32, %c0_i32_0, %c0_i32_1 : i32, i32, i32
  }
  func.func @transform_5(%arg0: i32) -> (i32, i32, i32) {
    %c0_i32 = arith.constant 0 : i32
    %c0_i32_0 = arith.constant 0 : i32
    %c0_i32_1 = arith.constant 0 : i32
    return %arg0, %c0_i32, %c0_i32_0 : i32, i32, i32
  }
}

</mosaic_0001>

<bundles_post_ra>
// kernel: tpu_custom_call.1
= control target key start
LH: loop header
LB: loop body
LE: loop exit
PB: predicated region body
PF: predicated region fallthrough
CT: control target
= control target key end

     0   :  { %10 = vsyncpa [#allocation3], 0  ;;  %s853_s0 = inlined_call_operand.hbm [shape: f32[2,4,256], index: 0, kind: input, shape index: {}]   ;;  %s854_s1 = inlined_call_operand.vmem [shape: f32[2,1,4], index: 1, kind: input, shape index: {}]   ;;  %s855_s2 = inlined_call_operand.vmem [shape: f32[1,4,4], index: 2, kind: input, shape index: {}]   ;;  %s856_s3 = inlined_call_operand.hbm [shape: f32[1,4,4], index: 3, kind: input, shape index: {}]   ;;  %s857_s4 = inlined_call_operand.vmem [shape: f32[1,4,1], index: 4, kind: input, shape index: {}]   ;;  %s858_s5 = inlined_call_operand.hbm [shape: f32[2,4,256], index: 5, kind: output, shape index: {}]  }
   0x1   :  { %12 = vsyncpa [#allocation3 + $0x1], 0 }
   0x2   :  { %13 = vsyncpa [#allocation6], 0 }
   0x3   :  { %14 = vsyncpa [#allocation4], 0 }
   0x4   :  { %16 = vsyncpa [#allocation4 + $0x1], 0  ;;  %s694_s18 = smov 0   ;;  %s696_s19 = smov 0  }
   0x5   :  { %s698_s20 = smov 0   ;;  %s700_s21 = smov 0  }
   0x6 LB: > { %s715_s22 = sadd.s32 4294967295, %s659_s21   ;;  %s445_s23 = sadd.s32 4294967294, %s659_s21   ;;  %s659_s21 = sphi %s700_s21, %s868_s21   ;;  %s655_s20 = sphi %s698_s20, %s867_s20   ;;  %s651_s19 = sphi %s696_s19, %s866_s19   ;;  %s647_s18 = sphi %s694_s18, %s865_s18  }
   0x7   : > { %p42_p0 = scmp.ne.s32.totalorder %s651_s19, %s647_s18  ;;  %p43_p1 = scmp.eq.s32.totalorder %s715_s22, 0 }
   0x8   : > { %p155_p2 = scmp.eq.s32.totalorder %s715_s22, 1  ;;  %p161_p3 = scmp.eq.s32.totalorder %s445_s23, 1 }
   0x9   : > { %p724_p4 = por %p43_p1, %p42_p0  ;;  %p446_p5 = scmp.ge.s32.totalorder %s659_s21, 1 }
   0xa   : > { %p729_p6 = por %p161_p3, %p42_p0  ;;  %p168_p7 = scmp.lt.s32.totalorder %s659_s21, 3 }
   0xb   : > { %s183_s28 = sshll.u32 %s856_s3, 4  ;;  %s661_s30 = smov [#allocation5]   ;;  %s184_s28 = int_to_ptr.hbm [resolvable:$true] %s183_s28 }
   0xc   : > { %p737_p8 = pnand %p446_p5, %p168_p7  ;;  %s185_s6 = sshll.u32 %s661_s30, 4  ;;  %s186_s6 = int_to_ptr.vmem [resolvable:$true] %s185_s6 }
   0xd   : > { %s747_s7 = sadd.s32 1, %s659_s21   ;;  %s29_s8 = sadd.s32 1, %s655_s20 }
   0xe   : > { %p472_p10 = pneg %p737_p8  ;;  %s26_s9 = ssub.s32 %s659_s21, %s747_s7 }
   0xf   : > { %p27_p12 = scmp.eq.s32.totalorder %s26_s9, 0  ;;  %p36_p13 = scmp.ne.s32.totalorder %s655_s20, %s651_s19 }
  0x10   : > { %p473_p11 = pnand %p472_p10, %p43_p1  ;;  %p37_p0 = scmp.eq.s32.totalorder %s659_s21, 0 }
  0x11   : > { %s756_s10 = scalar_select %p27_p12, %s655_s20, %s29_s8  }
  0x12   : > { %475 = dma.hbm_to_vmem [thread:$0]  (!%p473_p11), %s184_s28, 64, %s186_s6, [#allocation6]  }
  0x13   : > { %p760_p3 = por %p155_p2, %p36_p13  ;;  %p485_p5 = scmp.lt.s32.totalorder %s659_s21, 2 }
  0x14   : > { %s199_s12 = sand.u32 1, %s655_s20   ;;  %s462_s13 = sshll.u32 %s659_s21, 3 }
  0x15   : > { %p38_p7 = por %p37_p0, %p36_p13  ;;  %s449_s14 = sshll.u32 %s199_s12, 3 }
  0x16   : > { %s208_s17 = scalar_lea.hbm %s853_s0, %s462_s13  ;;  %s203_s26 = scalar_lea.vmem [#allocation2], %s449_s14 }
  0x17   : > { %s210_s23 = sshll.u32 %s208_s17, 4  ;;  %s212_s27 = sshll.u32 %s203_s26, 4  ;;  %s211_s23 = int_to_ptr.hbm [resolvable:$true] %s210_s23  ;;  %s213_s27 = int_to_ptr.vmem [resolvable:$true] %s212_s27 }
  0x18   : > { %p770_p10 = pnand %p485_p5, %p38_p7  ;;  %s200_s30 = scalar_lea.sflag [#allocation3], %s199_s12 }
  0x19   : > { %s559_s6 = sshra.s32 %s211_s23, 4  ;;  %s566_s14 = scalar_lea.hbm %s853_s0, 16  ;;  %s560_s6 = int_to_ptr.hbm [resolvable:$true] %s559_s6 }
  0x1a   : > { %s561_s8 = scalar_lea.hbm %s560_s6, 8  ;;  %p563_p11 = pneg %p770_p10 }
  0x1b   : > { %p562_p2 = scmp.ne.s32.totalorder %s560_s6, %s561_s8  ;;  %p567_p0 = scmp.lt.s32.totalorder %s560_s6, %s853_s0 }
  0x1c   : > { %p568_p5 = scmp.lt.s32.totalorder %s566_s14, %s561_s8 }
  0x1d   : > { %p564_p12 = pnand %p563_p11, %p562_p2 }
  0x1e   : > { %p569_p7 = por %p568_p5, %p567_p0 }
  0x1f   : > { %p565_p13 = pneg %p564_p12 }
  0x21   : > { %p570_p9 = pnand %p569_p7, %p565_p13 }
  0x23   : > { %573 = shalt.err (!%p570_p9)
}
  0x24   : > { %479 = dma.hbm_to_vmem [thread:$0]  (!%p770_p10), %s211_s23, 128, %s213_s27, %s200_s30  }
  0x25   : > { %227 = sbr.rel (%p737_p8) target bundleno = 468 (0x1d4), region = 40  ;;  %s787_s12 = sand.u32 (!%p737_p8), 1, %s651_s19  }
  0x26   : > { %s453_s17 = sshll.u32 (!%p737_p8), %s787_s12, 3  ;;  %s230_s26 = scalar_lea.sflag (!%p737_p8), [#allocation3], %s787_s12 }
  0x27   : > { %s233_s6 = scalar_lea.vmem (!%p737_p8), [#allocation2], %s453_s17 }
  0x2a   : > { %634 = dma.done.wait (%p724_p4), %s230_s26, 128  }
  0x2b   : > { %636 = vsyncadd (%p724_p4), %s230_s26, 4294967168 }
  0x2c   : > { %638 = dma.done.wait (%p43_p1), [#allocation6], 64  }
  0x2d   : > { %640 = vsyncadd (%p43_p1), [#allocation6], 4294967232  ;;  %v801_v0 = vld [vmem:[%s233_s6] sm:$0xff]  ;;  %vm279_vm0 = vcmask 1043456   ;;  %v286_v6 = vld [vmem:[%s855_s2] sm:$0xf] }
  0x2e   : > { %274 = vst [vmem:[#allocation1] ss:$2 sm:$0xff] %v801_v0  ;;  %vm288_vm1 = vcmask 27648   ;;  %p269_p1 = scmp.lt.s32.totalorder %s715_s22, 1  ;;  %v301_v21 = vld [vmem:[#allocation5] sm:$0xf] }
  0x2f   : > { %v662_v25 = vmov 0   ;;  %v307_v26 = vld [vmem:[%s857_s4] sm:$0xf]  ;;  %v663_v42 = vmov 839922192   ;;  %s463_s13 = sshll.u32 %s715_s22, 3 }
  0x30   : > { %s270_s23 = scalar_select %p269_p1, %s715_s22, 1  ;;  %523 = vset.pattern.permute.xlu1 %v662_v25  ;;  %524 = vset.pattern.permute.xlu0 %v662_v25  ;;  %v333_v43 = vunpack.c.l.s4 %v663_v42 }
  0x31   : > { %s351_s16 = scalar_lea.hbm %s858_s5, %s463_s13  ;;  %s268_s26 = scalar_lea.vmem [#allocation7], %s453_s17 }
  0x32   : > { %s271_s30 = scalar_lea.vmem %s854_s1, %s270_s23  ;;  %v334_v44 = vunpack.c.0.s8 %v333_v43  ;;  %s353_s6 = sshll.u32 %s268_s26, 4  ;;  %s354_s6 = int_to_ptr.vmem [resolvable:$true] %s353_s6 }
  0x33   : > { %v296_v16 = vld [vmem:[%s271_s30] sm:$0x1]  ;;  %s355_s24 = sshll.u32 %s351_s16, 4  ;;  %s340_s29 = scalar_lea.sflag [#allocation4], %s787_s12  ;;  %s356_s24 = int_to_ptr.hbm [resolvable:$true] %s355_s24 }
  0x34   : > { %s603_s23 = sshra.s32 %s356_s24, 4  ;;  %s609_s17 = scalar_lea.hbm %s858_s5, 16  ;;  %s604_s23 = int_to_ptr.hbm [resolvable:$true] %s603_s23 }
  0x35   : > { %v275_v1 = vld.sshfl [vmem:[#allocation1] sm:$0xff pattern:$0x75316420]  ;;  %v276_v2 = vld.sshfl [vmem:[#allocation1 + $0x8] sm:$0xff pattern:$0x75316420]  ;;  %p610_p10 = scmp.lt.s32.totalorder %s604_s23, %s858_s5 }
  0x36   : > { %v280_v3 = vsel %vm279_vm0, %v275_v1, 0.0  ;;  %v281_v4 = vsel %vm279_vm0, %v276_v2, 0.0  ;;  %s605_s22 = scalar_lea.hbm %s604_s23, 8 }
  0x37   : > { %v282_v5 = vadd.f32 %v281_v4, %v280_v3  ;;  %p606_p4 = scmp.ne.s32.totalorder %s604_s23, %s605_s22  ;;  %p611_p2 = scmp.lt.s32.totalorder %s609_s17, %s605_s22 }
  0x39   : > { %283 = vadd.xlane.f32.xlu0 %v282_v5  ;;  %p607_p8 = pnand %p606_p4, %p760_p3  ;;  %p612_p11 = por %p611_p2, %p610_p10 }
  0x3b   : > { %p608_p9 = pneg %p607_p8 }
  0x3d   : > { %p613_p12 = pnand %p612_p11, %p608_p9 }
  0xac   : > { %v284_v7 = vpop.xlane.xlu0 %283 }
  0xad   : > { %v285_v8 = vmul.f32 0.00390625, %v284_v7 }
  0xaf   : > { %v287_v9 = vmul.f32 %v286_v6, %v285_v8 }
  0xb1   : > { %v289_v10 = vsel %vm288_vm1, %v287_v9, 0.0 }
  0xb2   : > { %v290_v11 = vrot.slane %v289_v10, 4 }
  0xb4   : > { %v291_v12 = vadd.f32 %v290_v11, %v289_v10 }
  0xb6   : > { %v292_v13 = vrot.slane %v291_v12, 2 }
  0xb8   : > { %v293_v14 = vadd.f32 %v292_v13, %v291_v12 }
  0xba   : > { %v294_v15 = vrot.slane %v293_v14, 1 }
  0xbc   : > { %v295_v17 = vadd.f32 %v294_v15, %v293_v14 }
  0xbe   : > { %v297_v18 = vadd.f32 %v296_v16, %v295_v17 }
  0xc0   : > { %vm298_vm2 = vcmp.gt.f32.partialorder %v297_v18, 0.0  ;;  %v299_v19 = vmul.f32 0.01, %v297_v18 }
  0xc2   : > { %v300_v20 = vsel %vm298_vm2, %v297_v18, %v299_v19 }
  0xc3   : > { %v302_v22 = vperm.slane %v300_v20, 0 }
  0xc5   : > { %v303_v23 = vmul.f32 %v302_v22, %v301_v21 }
  0xc7   : > { %v304_v24 = vsel %vm288_vm1, %v303_v23, 0.0 }
  0xc8   : > { %305 = vadd.xlane.f32.xlu0 %v304_v24 }
 0x13b   : > { %v306_v27 = vpop.xlane.xlu0 %305 }
 0x13c   : > { %v308_v28 = vadd.f32 %v307_v26, %v306_v27 }
 0x13e   : > { %v456_v29 = vmul.f32 -1.442695, %v308_v28 }
 0x140   : > { %525 = vpow2.f32 %v456_v29 }
 0x146   : > { %v526_v30 = vpop.eup %525 }
 0x147   : > { %v312_v31 = vadd.f32 1.0, %v526_v30 }
 0x149   : > { %527 = vrcp.f32 %v312_v31  ;;  %v324_v35 = vand.u32 2147483648, %v312_v31  ;;  %v322_v37 = vand.u32 2147483647, %v312_v31  ;;  %vm318_vm4 = vweird.f32 %v312_v31 }
 0x14b   : > { %v325_v39 = vor.u32 1.1754944e-38, %v324_v35  ;;  %vm323_vm6 = vcmp.eq.f32.partialorder %v322_v37, 8.507059e+37 }
 0x14f   : > { %v528_v32 = vpop.eup %527 }
 0x150   : > { %v314_v33 = vmul.f32 %v528_v32, %v312_v31  ;;  %vm319_vm3 = vweird.f32 %v528_v32 }
 0x151   : > { %vm320_vm5 = vmor %vm318_vm4, %vm319_vm3 }
 0x152   : > { %v315_v34 = vsub.f32 1.0, %v314_v33 }
 0x154   : > { %v316_v36 = vmul.f32 %v528_v32, %v315_v34 }
 0x156   : > { %v317_v38 = vadd.f32 %v528_v32, %v316_v36 }
 0x158   : > { %v321_v40 = vsel %vm320_vm5, %v528_v32, %v317_v38 }
 0x159   : > { %v326_v41 = vsel %vm323_vm6, %v325_v39, %v321_v40 }
 0x15a   : > { %330 = vperm.xlu1 %523, %v326_v41  }
 0x1cc   : > { %v331_v45 = vpop.permute.xlu1 %330 }
 0x1cd   : > { %v335_v46 = vperm.slane %v331_v45, %v334_v44 }
 0x1cf   : > { %v337_v47 = vmul.f32 %v335_v46, %v801_v0 }
 0x1d1   : > { %338 = vst [vmem:[%s268_s26] sm:$0xff] %v337_v47 }
 0x1d2   : > { %616 = shalt.err (!%p613_p12)
}
 0x1d3   : > { %470 = dma.vmem_to_hbm [thread:$0]  (%p760_p3), %s354_s6, 128, %s356_s24, %s340_s29  }
 0x1d4 PF: > { %s367_s12 = sand.u32 1, %s647_s18   ;;  %p864_p13 = scmp.ge.s32.totalorder %s659_s21, 2 }
 0x1d5   : > { %s368_s9 = scalar_lea.sflag [#allocation4], %s367_s12 }
 0x1d6   : > { %p481_p0 = pnand %p864_p13, %p729_p6 }
 0x1d8   : > { %p482_p5 = pneg %p481_p0 }
 0x1da   : > { %642 = dma.done.wait (%p482_p5), %s368_s9, 128  }
 0x1db   : > { %644 = vsyncadd (%p482_p5), %s368_s9, 4294967168  ;;  %p19_p7 = scmp.ge.s32.totalorder %s747_s7, 4   ;;  %s865_s18 = smov %s651_s19 }
 0x1dc   : > { %s866_s19 = smov %s655_s20  ;;  %s867_s20 = smov %s756_s10 }
 0x1dd   : > { %s868_s21 = smov %s747_s7  ;;  %21 = sbr.rel (!%p19_p7) target bundleno = 6 (0x6), region = 92 }
 0x1e2   :  { %374 = vsyncpa [#allocation3], 1 }
 0x1e3   :  { %376 = vsyncpa [#allocation3 + $0x1], 1 }
 0x1e4   :  { %377 = vsyncpa [#allocation6], 1 }
 0x1e5   :  { %378 = vsyncpa [#allocation4], 1 }
 0x1e6   :  { %380 = vsyncpa [#allocation4 + $0x1], 1 }

</bundles_post_ra>
